<compile_context>
chip_gen: v7x
topology: tpu7x:2x2x1
jax: 0.10.0
libtpu: 0.0.40
codegen_flags: <defaults>
</compile_context>

<pallas_src>
import functools

import jax
import jax.numpy as jnp
from jax.experimental import pallas as pl
from jax.experimental.pallas import tpu as pltpu


def _round_up(x, m):
    return (x + m - 1) // m * m


def _vmem_capacity_bytes():
    """Physical VMEM per TensorCore; conservative 64 MiB fallback (v7x)."""
    try:
        info = pltpu.get_tpu_info()
        cap = getattr(info, "vmem_capacity_bytes", None)
        if cap:
            return int(cap)
    except Exception:
        pass
    return 64 * 2**20


def _num_tensorcores():
    """Best-effort TensorCore count per chip; falls back to 1 (v5e/v6e)."""
    try:
        info = pltpu.get_tpu_info()
        for name in ("num_tensorcores", "tensorcore_count", "num_cores",
                     "cores_per_chip"):
            v = getattr(info, name, None)
            if isinstance(v, int) and v > 0:
                return v
    except Exception:
        pass
    return 1


def _layer_norm(y, gamma, beta, eps, d_valid):
    """LayerNorm over the (possibly lane-padded) last axis, f32 math."""
    d_pad = y.shape[-1]
    padded = d_pad != d_valid
    if padded:
        lane = jax.lax.broadcasted_iota(jnp.int32, (1, d_pad), 1)
        mask = lane < d_valid
        y = jnp.where(mask, y, 0.0)
    inv_d = 1.0 / d_valid
    mean = jnp.sum(y, axis=-1, keepdims=True) * inv_d
    centered = y - mean
    if padded:
        centered = jnp.where(mask, centered, 0.0)
    var = jnp.sum(centered * centered, axis=-1, keepdims=True) * inv_d
    return centered * jax.lax.rsqrt(var + eps) * gamma + beta


def _ffn_ln_resident_kernel(x_ref, w1_ref, b1_ref, w2_ref, b2_ref, g_ref,
                            beta_ref, o_ref, *, eps, d_valid, mm_dtype):
    """Weight-resident fast path: both weight matrices live in VMEM."""
    x = x_ref[...]
    x_mm = x.astype(mm_dtype)
    # FC1 + ReLU (MXU, f32 accumulation)
    h = jnp.dot(x_mm, w1_ref[...], preferred_element_type=jnp.float32)
    h = jnp.maximum(h + b1_ref[...], 0.0)
    # FC2
    y = jnp.dot(h.astype(mm_dtype), w2_ref[...],
                preferred_element_type=jnp.float32)
    # TODO(synk): dropout is identity at inference; training-mode masking
    # (pltpu.prng_random_bits) is not implemented.
    y = y + b2_ref[...] + x.astype(jnp.float32)           # bias2 + residual
    out = _layer_norm(y, g_ref[...], beta_ref[...], eps, d_valid)
    o_ref[...] = out.astype(o_ref.dtype)


def _ffn_ln_blocked_kernel(x_ref, w1_ref, b1_ref, w2_ref, b2_ref, g_ref,
                           beta_ref, o_ref, acc_ref, *, eps, d_valid,
                           mm_dtype):
    """Blocked-hidden path: streams d_hid chunks, accumulates FC2 in f32."""
    k = pl.program_id(1)

    @pl.when(k == 0)
    def _():
        acc_ref[...] = jnp.zeros_like(acc_ref)

    x_mm = x_ref[...].astype(mm_dtype)
    h = jnp.dot(x_mm, w1_ref[...], preferred_element_type=jnp.float32)
    h = jnp.maximum(h + b1_ref[...], 0.0)
    acc_ref[...] += jnp.dot(h.astype(mm_dtype), w2_ref[...],
                            preferred_element_type=jnp.float32)

    @pl.when(k == pl.num_programs(1) - 1)
    def _():
        y = acc_ref[...] + b2_ref[...] + x_ref[...].astype(jnp.float32)
        out = _layer_norm(y, g_ref[...], beta_ref[...], eps, d_valid)
        o_ref[...] = out.astype(o_ref.dtype)


def prepare_ffn_params(w1, b1, w2, b2, gamma, beta, *,
                       matmul_dtype=jnp.bfloat16):
    """One-time parameter prep (transpose / pad to 128 / cast).

    PyTorch layouts: w1 (d_hid, d_in), b1 (d_hid,), w2 (d_in, d_hid),
    b2/gamma/beta (d_in,)."""
    d_hid, d_in = w1.shape
    d_pad = _round_up(d_in, 128)
    h_pad = _round_up(d_hid, 128)

    def pad2(a, rows, cols):
        return jnp.pad(a, ((0, rows - a.shape[0]), (0, cols - a.shape[1])))

    w1_t = pad2(jnp.transpose(w1), d_pad, h_pad).astype(matmul_dtype)  # (d_pad, h_pad)
    w2_t = pad2(jnp.transpose(w2), h_pad, d_pad).astype(matmul_dtype)  # (h_pad, d_pad)
    b1_p = jnp.pad(b1, (0, h_pad - d_hid)).reshape(1, h_pad).astype(jnp.float32)
    b2_p = jnp.pad(b2, (0, d_pad - d_in)).reshape(1, d_pad).astype(jnp.float32)
    g_p = jnp.pad(gamma, (0, d_pad - d_in)).reshape(1, d_pad).astype(jnp.float32)
    bt_p = jnp.pad(beta, (0, d_pad - d_in)).reshape(1, d_pad).astype(jnp.float32)
    return dict(w1_t=w1_t, b1=b1_p, w2_t=w2_t, b2=b2_p, gamma=g_p, beta=bt_p,
                d_in=d_in, d_hid=d_hid, matmul_dtype=matmul_dtype)


def positionwise_feed_forward(x, params, *, eps=1e-6, tile_rows=None,
                              force_blocked=False, hidden_chunk=None):
    """x: (batch, seq, d_in); params from prepare_ffn_params. Returns same shape."""
    batch, seq, d_in = x.shape
    assert d_in == params["d_in"], "feature dim mismatch with prepared params"
    w1_t, b1 = params["w1_t"], params["b1"]
    w2_t, b2 = params["w2_t"], params["b2"]
    gamma, beta = params["gamma"], params["beta"]
    mm_dtype = params["matmul_dtype"]
    d_pad, h_pad = w1_t.shape

    n = batch * seq
    io_bytes = jnp.dtype(x.dtype).itemsize
    mm_bytes = jnp.dtype(mm_dtype).itemsize

    vmem_budget = int(0.85 * _vmem_capacity_bytes())
    num_tc = _num_tensorcores()

    resident_w = 2 * d_pad * h_pad * mm_bytes

    def fp_resident(t):
        return (resident_w                                 # W1^T+W2^T, single-buffered
                + 4 * t * d_pad * io_bytes                 # x / out tiles, double-buffered
                + t * d_pad * mm_bytes                     # x bf16 cast
                + t * h_pad * (4 + mm_bytes)               # h f32 + bf16 cast
                + 4 * t * d_pad * 4                        # f32 temps (y, LN)
                + (2 * h_pad + 8 * d_pad) * 4)             # biases / gamma / beta

    n_cap = max(8, _round_up(n, 8))
    # Size gate (per review): keep weight-resident path only when it fits
    # comfortably; otherwise stream hidden chunks (removes v7x 64 MiB ceiling).
    use_blocked = force_blocked or (
        fp_resident(min(256, n_cap)) > int(0.8 * vmem_budget))

    tk_h = None
    if use_blocked:
        if hidden_chunk is not None:
            assert hidden_chunk % 128 == 0 and h_pad % hidden_chunk == 0
            tk_h = hidden_chunk
        else:
            tk_h = 128
            for cand in (1024, 512, 256):
                if (h_pad % cand == 0
                        and 4 * d_pad * cand * mm_bytes <= int(0.3 * vmem_budget)):
                    tk_h = cand
                    break

    def fp_blocked(t):
        return (4 * d_pad * tk_h * mm_bytes                # W1^T/W2^T chunks, double-buffered
                + 4 * t * d_pad * io_bytes                 # x / out tiles, double-buffered
                + t * d_pad * 4                            # f32 accumulator scratch
                + t * d_pad * mm_bytes                     # x bf16 cast
                + t * tk_h * (4 + mm_bytes)                # h chunk f32 + bf16 cast
                + 4 * t * d_pad * 4                        # f32 temps (y, LN)
                + (4 * tk_h + 8 * d_pad) * 4)              # biases / gamma / beta

    fp_fn = fp_blocked if use_blocked else fp_resident

    # Row tile: biggest that fits the VMEM budget (amortizes per-step overhead
    # and MXU fill/drain); capped at the (rounded) token count.
    if tile_rows is not None:
        tile = max(8, _round_up(min(tile_rows, n_cap), 8))
    else:
        max_tile = min(1024, n_cap)
        cands = sorted({c for c in (1024, 512, 256, 128, 64, 32, 16, 8, max_tile)
                        if c <= max_tile}, reverse=True)
        tile = 8
        for c in cands:
            if fp_fn(c) <= vmem_budget:
                tile = c
                break
        # Only split a single row tile in two when >=2 TensorCores can share
        # the parallel axis (v7x megacore); on 1-TC parts it is pure overhead.
        if num_tc >= 2 and pl.cdiv(n, tile) == 1 and n > 8:
            tile = max(8, _round_up((n + 1) // 2, 8))

    # Feature padding only when d_in is not lane-aligned; no row padding.
    x2d = x.reshape(n, d_in)
    if d_pad != d_in:
        x2d = jnp.pad(x2d, ((0, 0), (0, d_pad - d_in)))

    footprint = fp_fn(tile)
    vmem_limit = int(min(vmem_budget,
                         max(32 * 2**20, int(1.4 * footprint), footprint)))

    rows_eff = pl.cdiv(n, tile) * tile
    cost = pl.CostEstimate(
        flops=4 * rows_eff * d_pad * h_pad,                # two matmuls
        transcendentals=rows_eff,                          # rsqrt per row
        bytes_accessed=int(2 * n * d_pad * io_bytes
                           + 2 * d_pad * h_pad * mm_bytes),
    )

    const = pl.Buffered(1)  # constant-index params: no pointless double buffer

    if not use_blocked:
        kernel = functools.partial(_ffn_ln_resident_kernel, eps=eps,
                                   d_valid=d_in, mm_dtype=mm_dtype)
        out2d = pl.pallas_call(
            kernel,
            out_shape=jax.ShapeDtypeStruct((n, d_pad), x.dtype),
            grid_spec=pltpu.PrefetchScalarGridSpec(
                num_scalar_prefetch=0,
                grid=(pl.cdiv(n, tile),),
                in_specs=[
                    pl.BlockSpec((tile, d_pad), lambda i: (i, 0)),     # x tile
                    pl.BlockSpec((d_pad, h_pad), lambda i: (0, 0),
                                 pipeline_mode=const),                 # W1^T
                    pl.BlockSpec((1, h_pad), lambda i: (0, 0),
                                 pipeline_mode=const),                 # b1
                    pl.BlockSpec((h_pad, d_pad), lambda i: (0, 0),
                                 pipeline_mode=const),                 # W2^T
                    pl.BlockSpec((1, d_pad), lambda i: (0, 0),
                                 pipeline_mode=const),                 # b2
                    pl.BlockSpec((1, d_pad), lambda i: (0, 0),
                                 pipeline_mode=const),                 # gamma
                    pl.BlockSpec((1, d_pad), lambda i: (0, 0),
                                 pipeline_mode=const),                 # beta
                ],
                out_specs=pl.BlockSpec((tile, d_pad), lambda i: (i, 0)),
            ),
            compiler_params=pltpu.CompilerParams(
                dimension_semantics=("parallel",),
                vmem_limit_bytes=vmem_limit),
            cost_estimate=cost,
        )(x2d, w1_t, b1, w2_t, b2, gamma, beta)
    else:
        kernel = functools.partial(_ffn_ln_blocked_kernel, eps=eps,
                                   d_valid=d_in, mm_dtype=mm_dtype)
        out2d = pl.pallas_call(
            kernel,
            out_shape=jax.ShapeDtypeStruct((n, d_pad), x.dtype),
            grid_spec=pltpu.PrefetchScalarGridSpec(
                num_scalar_prefetch=0,
                # Row axis first (parallel -> megacore), hidden-chunk axis
                # last (arbitrary reduction, accumulator stays resident).
                grid=(pl.cdiv(n, tile), h_pad // tk_h),
                in_specs=[
                    pl.BlockSpec((tile, d_pad), lambda i, k: (i, 0)),  # x tile
                    pl.BlockSpec((d_pad, tk_h), lambda i, k: (0, k)),  # W1^T col chunk
                    pl.BlockSpec((1, tk_h), lambda i, k: (0, k)),      # b1 chunk
                    pl.BlockSpec((tk_h, d_pad), lambda i, k: (k, 0)),  # W2^T row chunk
                    pl.BlockSpec((1, d_pad), lambda i, k: (0, 0),
                                 pipeline_mode=const),                 # b2
                    pl.BlockSpec((1, d_pad), lambda i, k: (0, 0),
                                 pipeline_mode=const),                 # gamma
                    pl.BlockSpec((1, d_pad), lambda i, k: (0, 0),
                                 pipeline_mode=const),                 # beta
                ],
                out_specs=pl.BlockSpec((tile, d_pad), lambda i, k: (i, 0)),
                scratch_shapes=[pltpu.VMEM((tile, d_pad), jnp.float32)],
            ),
            compiler_params=pltpu.CompilerParams(
                dimension_semantics=("parallel", "arbitrary"),
                vmem_limit_bytes=vmem_limit),
            cost_estimate=cost,
        )(x2d, w1_t, b1, w2_t, b2, gamma, beta)

    if d_pad != d_in:
        out2d = out2d[:, :d_in]
    return out2d.reshape(batch, seq, d_in)


def _reference(x, w1, b1, w2, b2, gamma, beta, eps=1e-6):
    h = jnp.maximum(jnp.einsum("bsd,hd->bsh", x, w1) + b1, 0.0)
    y = jnp.einsum("bsh,dh->bsd", h, w2) + b2
    y = y + x
    mean = jnp.mean(y, axis=-1, keepdims=True)
    var = jnp.mean((y - mean) ** 2, axis=-1, keepdims=True)
    return (y - mean) / jnp.sqrt(var + eps) * gamma + beta


def _run_case(key, batch, seq, d_in, d_hid, **kwargs):
    kx, k1, kb1, k2, kb2 = jax.random.split(key, 5)
    x = jax.random.normal(kx, (batch, seq, d_in), dtype=jnp.float32)
    bound1 = 1.0 / (d_in ** 0.5)
    w1 = jax.random.uniform(k1, (d_hid, d_in), minval=-bound1, maxval=bound1)
    b1 = jax.random.uniform(kb1, (d_hid,), minval=-bound1, maxval=bound1)
    bound2 = 1.0 / (d_hid ** 0.5)
    w2 = jax.random.uniform(k2, (d_in, d_hid), minval=-bound2, maxval=bound2)
    b2 = jax.random.uniform(kb2, (d_in,), minval=-bound2, maxval=bound2)
    gamma = jnp.ones((d_in,), dtype=jnp.float32)
    beta = jnp.zeros((d_in,), dtype=jnp.float32)

    params = prepare_ffn_params(w1, b1, w2, b2, gamma, beta)  # hoisted, one-time
    out = positionwise_feed_forward(x, params, **kwargs)
    out = jax.block_until_ready(out)

    ref = _reference(x, w1, b1, w2, b2, gamma, beta)
    assert out.shape == (batch, seq, d_in)
    # bf16 matmul operands (f32 accumulation) vs. f32 reference -> loose tol.
    assert jnp.allclose(out, ref, atol=5e-2, rtol=5e-2), (
        f"mismatch vs reference (max err {jnp.max(jnp.abs(out - ref))})")


if __name__ == "__main__":
    key = jax.random.PRNGKey(0)
    k_a, k_b, k_c = jax.random.split(key, 3)

    # Case 1: small / non-128 feature dims -> exercises lane padding.
    _run_case(k_a, batch=2, seq=8, d_in=32, d_hid=64)
    # Case 2: lane-dense features, ragged rows -> exercises partial edge tile.
    _run_case(k_b, batch=2, seq=12, d_in=128, d_hid=128, tile_rows=16)
    # Case 3: forced blocked-hidden (K-chunked) variant with 2 hidden chunks
    # -> exercises accumulator init / accumulate / finalize path.
    _run_case(k_c, batch=2, seq=16, d_in=128, d_hid=256,
              force_blocked=True, hidden_chunk=128)

    print("KERNEL_OK")
</pallas_src>

<mosaic_0001>
module attributes {stable_mosaic.version = 11 : i64} {
  func.func @_ffn_ln_resident_kernel(%arg0: i32, %arg1: memref<16x128xf32, #tpu.memory_space<vmem>>, %arg2: memref<128x128xbf16, #tpu.memory_space<vmem>>, %arg3: memref<1x128xf32, #tpu.memory_space<vmem>>, %arg4: memref<128x128xbf16, #tpu.memory_space<vmem>>, %arg5: memref<1x128xf32, #tpu.memory_space<vmem>>, %arg6: memref<1x128xf32, #tpu.memory_space<vmem>>, %arg7: memref<1x128xf32, #tpu.memory_space<vmem>>, %arg8: memref<16x128xf32, #tpu.memory_space<vmem>>) attributes {dimension_semantics = [#tpu.dimension_semantics<parallel>], iteration_bounds = array<i64: 1>, scalar_prefetch = 0 : i64, scratch_operands = 0 : i64, tpu.core_type = #tpu.core_type<tc>, window_params = [{transform_indices = @transform_0, window_bounds = array<i64: 16, 128>}, {pipeline_mode = #tpu.pipeline_mode<synchronous>, transform_indices = @transform_1, window_bounds = array<i64: 128, 128>}, {pipeline_mode = #tpu.pipeline_mode<synchronous>, transform_indices = @transform_2, window_bounds = array<i64: 1, 128>}, {pipeline_mode = #tpu.pipeline_mode<synchronous>, transform_indices = @transform_3, window_bounds = array<i64: 128, 128>}, {pipeline_mode = #tpu.pipeline_mode<synchronous>, transform_indices = @transform_4, window_bounds = array<i64: 1, 128>}, {pipeline_mode = #tpu.pipeline_mode<synchronous>, transform_indices = @transform_5, window_bounds = array<i64: 1, 128>}, {pipeline_mode = #tpu.pipeline_mode<synchronous>, transform_indices = @transform_6, window_bounds = array<i64: 1, 128>}, {transform_indices = @transform_7, window_bounds = array<i64: 16, 128>}]} {
    %c0 = arith.constant 0 : index
    %c0_0 = arith.constant 0 : index
    %0 = vector.load %arg1[%c0, %c0_0] : memref<16x128xf32, #tpu.memory_space<vmem>>, vector<16x128xf32>
    %1 = arith.truncf %0 : vector<16x128xf32> to vector<16x128xbf16>
    %c0_1 = arith.constant 0 : index
    %c0_2 = arith.constant 0 : index
    %2 = vector.load %arg2[%c0_1, %c0_2] : memref<128x128xbf16, #tpu.memory_space<vmem>>, vector<128x128xbf16>
    %cst = arith.constant dense<0.000000e+00> : vector<16x128xf32>
    %3 = tpu.matmul %1, %2, %cst {dimension_numbers = #tpu.dot_dimension_numbers<[1], [0], [0], [1], [0, 0, 1, 1], [], []>} : vector<16x128xbf16>, vector<128x128xbf16>, vector<16x128xf32> -> vector<16x128xf32>
    %c0_3 = arith.constant 0 : index
    %c0_4 = arith.constant 0 : index
    %4 = vector.load %arg3[%c0_3, %c0_4] : memref<1x128xf32, #tpu.memory_space<vmem>>, vector<1x128xf32>
    %5 = vector.broadcast %4 : vector<1x128xf32> to vector<16x128xf32>
    %6 = arith.addf %3, %5 : vector<16x128xf32>
    %cst_5 = arith.constant 0.000000e+00 : f32
    %7 = vector.broadcast %cst_5 : f32 to vector<16x128xf32>
    %8 = arith.maximumf %6, %7 : vector<16x128xf32>
    %9 = arith.truncf %8 : vector<16x128xf32> to vector<16x128xbf16>
    %c0_6 = arith.constant 0 : index
    %c0_7 = arith.constant 0 : index
    %10 = vector.load %arg4[%c0_6, %c0_7] : memref<128x128xbf16, #tpu.memory_space<vmem>>, vector<128x128xbf16>
    %cst_8 = arith.constant dense<0.000000e+00> : vector<16x128xf32>
    %11 = tpu.matmul %9, %10, %cst_8 {dimension_numbers = #tpu.dot_dimension_numbers<[1], [0], [0], [1], [0, 0, 1, 1], [], []>} : vector<16x128xbf16>, vector<128x128xbf16>, vector<16x128xf32> -> vector<16x128xf32>
    %c0_9 = arith.constant 0 : index
    %c0_10 = arith.constant 0 : index
    %12 = vector.load %arg5[%c0_9, %c0_10] : memref<1x128xf32, #tpu.memory_space<vmem>>, vector<1x128xf32>
    %13 = vector.broadcast %12 : vector<1x128xf32> to vector<16x128xf32>
    %14 = arith.addf %11, %13 : vector<16x128xf32>
    %15 = arith.addf %14, %0 : vector<16x128xf32>
    %c0_11 = arith.constant 0 : index
    %c0_12 = arith.constant 0 : index
    %16 = vector.load %arg6[%c0_11, %c0_12] : memref<1x128xf32, #tpu.memory_space<vmem>>, vector<1x128xf32>
    %c0_13 = arith.constant 0 : index
    %c0_14 = arith.constant 0 : index
    %17 = vector.load %arg7[%c0_13, %c0_14] : memref<1x128xf32, #tpu.memory_space<vmem>>, vector<1x128xf32>
    %18 = tpu.iota {dimensions = array<i32: 1>} : vector<1x128xi32>
    %c32_i32 = arith.constant 32 : i32
    %19 = vector.broadcast %c32_i32 : i32 to vector<1x128xi32>
    %20 = arith.cmpi slt, %18, %19 : vector<1x128xi32>
    %cst_15 = arith.constant 0.000000e+00 : f32
    %21 = vector.shape_cast %20 : vector<1x128xi1> to vector<1x128xi1>
    %22 = vector.broadcast %21 : vector<1x128xi1> to vector<16x128xi1>
    %23 = vector.broadcast %cst_15 : f32 to vector<16x128xf32>
    %24 = arith.select %22, %15, %23 : vector<16x128xi1>, vector<16x128xf32>
    %cst_16 = arith.constant dense<0.000000e+00> : vector<16xf32>
    %25 = vector.multi_reduction <add>, %24, %cst_16 [1] : vector<16x128xf32> to vector<16xf32>
    %26 = vector.shape_cast %25 : vector<16xf32> to vector<16x1xf32>
    %cst_17 = arith.constant 3.125000e-02 : f32
    %27 = vector.broadcast %cst_17 : f32 to vector<16x1xf32>
    %28 = arith.mulf %26, %27 : vector<16x1xf32>
    %29 = vector.broadcast %28 : vector<16x1xf32> to vector<16x128xf32>
    %30 = arith.subf %24, %29 : vector<16x128xf32>
    %cst_18 = arith.constant 0.000000e+00 : f32
    %31 = vector.shape_cast %20 : vector<1x128xi1> to vector<1x128xi1>
    %32 = vector.broadcast %31 : vector<1x128xi1> to vector<16x128xi1>
    %33 = vector.broadcast %cst_18 : f32 to vector<16x128xf32>
    %34 = arith.select %32, %30, %33 : vector<16x128xi1>, vector<16x128xf32>
    %35 = arith.mulf %34, %34 : vector<16x128xf32>
    %cst_19 = arith.constant dense<0.000000e+00> : vector<16xf32>
    %36 = vector.multi_reduction <add>, %35, %cst_19 [1] : vector<16x128xf32> to vector<16xf32>
    %37 = vector.shape_cast %36 : vector<16xf32> to vector<16x1xf32>
    %cst_20 = arith.constant 3.125000e-02 : f32
    %38 = vector.broadcast %cst_20 : f32 to vector<16x1xf32>
    %39 = arith.mulf %37, %38 : vector<16x1xf32>
    %cst_21 = arith.constant 9.99999997E-7 : f32
    %40 = vector.broadcast %cst_21 : f32 to vector<16x1xf32>
    %41 = arith.addf %39, %40 : vector<16x1xf32>
    %42 = math.rsqrt %41 : vector<16x1xf32>
    %43 = vector.broadcast %42 : vector<16x1xf32> to vector<16x128xf32>
    %44 = arith.mulf %34, %43 : vector<16x128xf32>
    %45 = vector.broadcast %16 : vector<1x128xf32> to vector<16x128xf32>
    %46 = arith.mulf %44, %45 : vector<16x128xf32>
    %47 = vector.broadcast %17 : vector<1x128xf32> to vector<16x128xf32>
    %48 = arith.addf %46, %47 : vector<16x128xf32>
    %c0_22 = arith.constant 0 : index
    %c0_23 = arith.constant 0 : index
    %49 = vector.load %arg8[%c0_22, %c0_23] : memref<16x128xf32, #tpu.memory_space<vmem>>, vector<16x128xf32>
    tpu.vector_store %arg8[%c0_22, %c0_23], %48 {strides = array<i32>} : memref<16x128xf32, #tpu.memory_space<vmem>>, vector<16x128xf32>,
    return
  }
  func.func @transform_0(%arg0: i32) -> (i32, i32) {
    %c0_i32 = arith.constant 0 : i32
    %c0_i32_0 = arith.constant 0 : i32
    return %arg0, %c0_i32 : i32, i32
  }
  func.func @transform_1(%arg0: i32) -> (i32, i32) {
    %c0_i32 = arith.constant 0 : i32
    %c0_i32_0 = arith.constant 0 : i32
    %c0_i32_1 = arith.constant 0 : i32
    return %c0_i32, %c0_i32_0 : i32, i32
  }
  func.func @transform_2(%arg0: i32) -> (i32, i32) {
    %c0_i32 = arith.constant 0 : i32
    %c0_i32_0 = arith.constant 0 : i32
    %c0_i32_1 = arith.constant 0 : i32
    return %c0_i32, %c0_i32_0 : i32, i32
  }
  func.func @transform_3(%arg0: i32) -> (i32, i32) {
    %c0_i32 = arith.constant 0 : i32
    %c0_i32_0 = arith.constant 0 : i32
    %c0_i32_1 = arith.constant 0 : i32
    return %c0_i32, %c0_i32_0 : i32, i32
  }
  func.func @transform_4(%arg0: i32) -> (i32, i32) {
    %c0_i32 = arith.constant 0 : i32
    %c0_i32_0 = arith.constant 0 : i32
    %c0_i32_1 = arith.constant 0 : i32
    return %c0_i32, %c0_i32_0 : i32, i32
  }
  func.func @transform_5(%arg0: i32) -> (i32, i32) {
    %c0_i32 = arith.constant 0 : i32
    %c0_i32_0 = arith.constant 0 : i32
    %c0_i32_1 = arith.constant 0 : i32
    return %c0_i32, %c0_i32_0 : i32, i32
  }
  func.func @transform_6(%arg0: i32) -> (i32, i32) {
    %c0_i32 = arith.constant 0 : i32
    %c0_i32_0 = arith.constant 0 : i32
    %c0_i32_1 = arith.constant 0 : i32
    return %c0_i32, %c0_i32_0 : i32, i32
  }
  func.func @transform_7(%arg0: i32) -> (i32, i32) {
    %c0_i32 = arith.constant 0 : i32
    %c0_i32_0 = arith.constant 0 : i32
    return %arg0, %c0_i32 : i32, i32
  }
}

</mosaic_0001>

<bundles_post_ra>
// kernel: tpu_custom_call.1
= control target key start
LH: loop header
LB: loop body
LE: loop exit
PB: predicated region body
PF: predicated region fallthrough
CT: control target
= control target key end

     0   :  { %12 = vsyncpa [#allocation3], 0  ;;  %s698_s0 = inlined_call_operand.hbm [shape: f32[16,128], index: 0, kind: input, shape index: {}]   ;;  %s699_s1 = inlined_call_operand.hbm [shape: bf16[128,128], index: 1, kind: input, shape index: {}]   ;;  %s700_s2 = inlined_call_operand.vmem [shape: f32[1,128], index: 2, kind: input, shape index: {}]   ;;  %s701_s3 = inlined_call_operand.hbm [shape: bf16[128,128], index: 3, kind: input, shape index: {}]   ;;  %s702_s4 = inlined_call_operand.vmem [shape: f32[1,128], index: 4, kind: input, shape index: {}]   ;;  %s703_s5 = inlined_call_operand.vmem [shape: f32[1,128], index: 5, kind: input, shape index: {}]   ;;  %s704_s6 = inlined_call_operand.vmem [shape: f32[1,128], index: 6, kind: input, shape index: {}]   ;;  %s705_s7 = inlined_call_operand.hbm [shape: f32[16,128], index: 7, kind: output, shape index: {}]  }
   0x1   :  { %13 = vsyncpa [#allocation6], 0 }
   0x2   :  { %14 = vsyncpa [#allocation4], 0  ;;  %s572_s24 = smov [#allocation5]   ;;  %s478_s28 = scalar_lea.hbm %s699_s1, 1024 }
   0x3   :  { %s32_s25 = sshll.u32 %s572_s24, 4  ;;  %p479_p0 = scmp.ne.s32.totalorder %s699_s1, %s478_s28  ;;  %s33_s25 = int_to_ptr.vmem [resolvable:$true] %s32_s25 }
   0x4   :  { %p482_p1 = scmp.lt.u32.totalorder %s478_s28, %s699_s1 }
   0x6   :  { %p484_p2 = pnand %p482_p1, %p479_p0 }
   0x8   :  { %487 = shalt.err (!%p484_p2)
}
   0x9   :  { %s488_s10 = scalar_lea.vmem %s33_s25, 1024  ;;  %p493_p4 = scmp.lt.s32.totalorder %s33_s25, %s33_s25 }
   0xa   :  { %p489_p3 = scmp.ne.s32.totalorder %s33_s25, %s488_s10  ;;  %p494_p5 = scmp.lt.s32.totalorder %s488_s10, %s488_s10 }
   0xc   :  { %p495_p6 = por %p494_p5, %p493_p4 }
   0xe   :  { %p496_p7 = pnand %p495_p6, %p489_p3 }
  0x10   :  { %499 = shalt.err (!%p496_p7)
}
  0x11   :  { %s573_s11 = smov 64   ;;  %s574_s12 = smov 4  }
  0x12   :  { %38 = dma.hbm_to_vmem [thread:$0]  %s699_s1, 1024, %s33_s25, [#allocation6], %s573_s11, %s573_s11, %s574_s12  }
  0x13   :  { %s575_s15 = smov [#allocation2]   ;;  %s500_s19 = scalar_lea.hbm %s698_s0, 256 }
  0x14   :  { %s20_s16 = sshll.u32 %s575_s15, 4  ;;  %p501_p8 = scmp.ne.s32.totalorder %s698_s0, %s500_s19  ;;  %s21_s16 = int_to_ptr.vmem [resolvable:$true] %s20_s16 }
  0x15   :  { %p504_p9 = scmp.lt.u32.totalorder %s500_s19, %s698_s0 }
  0x17   :  { %p506_p10 = pnand %p504_p9, %p501_p8 }
  0x19   :  { %509 = shalt.err (!%p506_p10)
}
  0x1a   :  { %s510_s24 = scalar_lea.vmem %s21_s16, 256  ;;  %p515_p12 = scmp.lt.s32.totalorder %s21_s16, %s21_s16 }
  0x1b   :  { %p511_p11 = scmp.ne.s32.totalorder %s21_s16, %s510_s24  ;;  %p516_p13 = scmp.lt.s32.totalorder %s510_s24, %s510_s24 }
  0x1d   :  { %p517_p0 = por %p516_p13, %p515_p12 }
  0x1f   :  { %p518_p1 = pnand %p517_p0, %p511_p11 }
  0x21   :  { %521 = shalt.err (!%p518_p1)
}
  0x22   :  { %s576_s1 = smov 128   ;;  %s577_s25 = smov 8  }
  0x23   :  { %26 = dma.hbm_to_vmem [thread:$0]  %s698_s0, 256, %s21_s16, [#allocation3], %s576_s1, %s576_s1, %s577_s25  }
  0x24   :  { %s578_s28 = smov [#allocation7]   ;;  %s522_s9 = scalar_lea.hbm %s701_s3, 1024 }
  0x25   :  { %s46_s29 = sshll.u32 %s578_s28, 4  ;;  %p523_p2 = scmp.ne.s32.totalorder %s701_s3, %s522_s9  ;;  %s47_s29 = int_to_ptr.vmem [resolvable:$true] %s46_s29 }
  0x26   :  { %p526_p3 = scmp.lt.u32.totalorder %s522_s9, %s701_s3 }
  0x28   :  { %p528_p4 = pnand %p526_p3, %p523_p2 }
  0x2a   :  { %531 = shalt.err (!%p528_p4)
}
  0x2b   :  { %s532_s17 = scalar_lea.vmem %s47_s29, 1024  ;;  %p537_p6 = scmp.lt.s32.totalorder %s47_s29, %s47_s29 }
  0x2c   :  { %p533_p5 = scmp.ne.s32.totalorder %s47_s29, %s532_s17  ;;  %p538_p7 = scmp.lt.s32.totalorder %s532_s17, %s532_s17 }
  0x2e   :  { %p539_p8 = por %p538_p7, %p537_p6 }
  0x30   :  { %p540_p9 = pnand %p539_p8, %p533_p5 }
  0x32   :  { %543 = shalt.err (!%p540_p9)
}
  0x33   :  { %52 = dma.hbm_to_vmem [thread:$0]  %s701_s3, 1024, %s47_s29, [#allocation6], %s573_s11, %s573_s11, %s574_s12  }
  0x34   :  { %566 = dma.done.wait [#allocation3], 256  }
  0x35   :  { %567 = vsyncadd [#allocation3], 4294967040 }
  0x36   :  { %568 = dma.done.wait [#allocation6], 2048  }
  0x37   :  { %569 = vsyncadd [#allocation6], 4294965248  ;;  %v579_v0 = vmov 0.0   ;;  %vm580_vm0 = vmmov 0   ;;  %v458_v1 = vld [vmem:[#allocation5] sm:$0xff]   ;;  %v459_v2 = vld [vmem:[#allocation5 + $0x8] sm:$0xff]   ;;  %v303_v30 = vlaneseq }
  0x38   :  { %408 = vmatprep.subr.bf16.mxu0 %v579_v0  ;;  %424 = vmatprep.mubr.msk.bf16.mxu0 %vm580_vm0, %v579_v0  ;;  %v460_v3 = vld [vmem:[#allocation5 + $0x10] sm:$0xff]   ;;  %v466_v4 = vld [vmem:[#allocation7] sm:$0xff]   ;;  %v461_v5 = vld [vmem:[#allocation5 + $0x18] sm:$0xff]   ;;  %s581_s21 = smov [#allocation8]  }
  0x39   :  { %428 = vmatprep.subr.bf16.mxu1 %v579_v0  ;;  %444 = vmatprep.mubr.msk.bf16.mxu1 %vm580_vm0, %v579_v0  ;;  %v467_v6 = vld [vmem:[#allocation7 + $0x8] sm:$0xff]   ;;  %v462_v7 = vld [vmem:[#allocation5 + $0x20] sm:$0xff]   ;;  %v468_v8 = vld [vmem:[#allocation7 + $0x10] sm:$0xff]   ;;  %v304_v32 = vand.u32 127, %v303_v30  ;;  %s357_s22 = sshll.u32 %s581_s21, 4  ;;  %s358_s22 = int_to_ptr.vmem [resolvable:$true] %s357_s22 }
  0x3a   :  { %409 = vmatpush3.bf16.msra.mxu0 %v458_v1  ;;  %429 = vmatpush3.bf16.msra.mxu1 %v466_v4  ;;  %v463_v9 = vld [vmem:[#allocation5 + $0x28] sm:$0xff]   ;;  %v469_v10 = vld [vmem:[#allocation7 + $0x18] sm:$0xff]   ;;  %v464_v11 = vld [vmem:[#allocation5 + $0x30] sm:$0xff]   ;;  %s544_s23 = scalar_lea.vmem %s358_s22, 256  ;;  %p549_p11 = scmp.lt.s32.totalorder %s358_s22, %s358_s22 }
  0x3b   :  { %410 = vmatprep.subr.bf16.mxu0 %v579_v0  ;;  %430 = vmatprep.subr.bf16.mxu1 %v579_v0  ;;  %v470_v12 = vld [vmem:[#allocation7 + $0x20] sm:$0xff]   ;;  %v465_v13 = vld [vmem:[#allocation5 + $0x38] sm:$0xff]   ;;  %v69_v14 = vld [vmem:[#allocation2] sm:$0xff]  ;;  %vm305_vm1 = vcmp.lt.s32.totalorder %v304_v32, 32  ;;  %p545_p10 = scmp.ne.s32.totalorder %s358_s22, %s544_s23  ;;  %p550_p12 = scmp.lt.s32.totalorder %s544_s23, %s544_s23 }
  0x3c   :  { %v70_v15 = vld [vmem:[#allocation2 + $0x8] sm:$0xff]  ;;  %v471_v16 = vld [vmem:[#allocation7 + $0x28] sm:$0xff]   ;;  %v472_v18 = vld [vmem:[#allocation7 + $0x30] sm:$0xff]  }
  0x3d   :  { %v71_v17 = vpack.c.bf16 %v70_v15, %v69_v14  ;;  %v473_v19 = vld [vmem:[#allocation7 + $0x38] sm:$0xff]   ;;  %v370_v20 = vld [vmem:[%s700_s2] ss:$0 sm:$0xff]  ;;  %p551_p13 = por %p550_p12, %p549_p11 }
  0x3e   :  { %411 = vmatpush3.bf16.msra.mxu0 %v459_v2  ;;  %431 = vmatpush3.bf16.msra.mxu1 %v467_v6  ;;  %v379_v31 = vld [vmem:[%s702_s4] ss:$0 sm:$0xff] }
  0x3f   :  { %412 = vmatprep.subr.bf16.mxu0 %v579_v0  ;;  %432 = vmatprep.subr.bf16.mxu1 %v579_v0  ;;  %v388_v60 = vld [vmem:[%s703_s5] ss:$0 sm:$0xff]  ;;  %p552_p0 = pnand %p551_p13, %p545_p10 }
  0x40   :  { %v389_v62 = vld [vmem:[%s704_s6] ss:$0 sm:$0xff] }
  0x42   :  { %413 = vmatpush3.bf16.msra.mxu0 %v460_v3  ;;  %433 = vmatpush3.bf16.msra.mxu1 %v468_v8 }
  0x43   :  { %414 = vmatprep.subr.bf16.mxu0 %v579_v0  ;;  %434 = vmatprep.subr.bf16.mxu1 %v579_v0 }
  0x46   :  { %415 = vmatpush3.bf16.msra.mxu0 %v461_v5  ;;  %435 = vmatpush3.bf16.msra.mxu1 %v469_v10 }
  0x47   :  { %416 = vmatprep.subr.bf16.mxu0 %v579_v0  ;;  %436 = vmatprep.subr.bf16.mxu1 %v579_v0 }
  0x4a   :  { %417 = vmatpush3.bf16.msra.mxu0 %v462_v7  ;;  %437 = vmatpush3.bf16.msra.mxu1 %v470_v12 }
  0x4b   :  { %418 = vmatprep.subr.bf16.mxu0 %v579_v0  ;;  %438 = vmatprep.subr.bf16.mxu1 %v579_v0 }
  0x4e   :  { %419 = vmatpush3.bf16.msra.mxu0 %v463_v9  ;;  %439 = vmatpush3.bf16.msra.mxu1 %v471_v16 }
  0x4f   :  { %420 = vmatprep.subr.bf16.mxu0 %v579_v0  ;;  %440 = vmatprep.subr.bf16.mxu1 %v579_v0 }
  0x52   :  { %421 = vmatpush3.bf16.msra.mxu0 %v464_v11  ;;  %441 = vmatpush3.bf16.msra.mxu1 %v472_v18 }
  0x53   :  { %422 = vmatprep.subr.bf16.mxu0 %v579_v0  ;;  %442 = vmatprep.subr.bf16.mxu1 %v579_v0 }
  0x56   :  { %423 = vmatpush3.bf16.msra.mxu0 %v465_v13  ;;  %443 = vmatpush3.bf16.msra.mxu1 %v473_v19 }
  0x59   :  { %425 = vmatmul.mubr.bf16.vlgmr.msra.gmra.mrb[0].mxu0 %v71_v17 }
 0x12c   :  { %v177_v21 = vpop.f32.mrb[0].mxu0 }
 0x12d   :  { %v178_v22 = vadd.f32 %v370_v20, %v177_v21  ;;  %v426_v23 = vpop.f32.mrb[1].mxu0 }
 0x12e   :  { %v180_v24 = vpop.f32.mrb[2].mxu0 }
 0x12f   :  { %v181_v25 = vadd.f32 %v370_v20, %v180_v24  ;;  %v427_v26 = vpop.f32.mrb[3].mxu0  ;;  %v184_v27 = vmax.f32 %v178_v22, 0.0 }
 0x131   :  { %v185_v28 = vmax.f32 %v181_v25, 0.0 }
 0x133   :  { %v186_v29 = vpack.c.bf16 %v185_v28, %v184_v27 }
 0x135   :  { %445 = vmatmul.mubr.bf16.vlgmr.msra.gmra.mrb[0].mxu1 %v186_v29 }
 0x208   :  { %v292_v33 = vpop.f32.mrb[0].mxu1 }
 0x209   :  { %v293_v34 = vadd.f32 %v379_v31, %v292_v33  ;;  %v446_v35 = vpop.f32.mrb[1].mxu1 }
 0x20a   :  { %v295_v36 = vpop.f32.mrb[2].mxu1 }
 0x20b   :  { %v296_v37 = vadd.f32 %v379_v31, %v295_v36  ;;  %v447_v38 = vpop.f32.mrb[3].mxu1  ;;  %v299_v39 = vadd.f32 %v293_v34, %v69_v14 }
 0x20d   :  { %v308_v40 = vsel %vm305_vm1, %v299_v39, 0.0  ;;  %v300_v41 = vadd.f32 %v296_v37, %v70_v15 }
 0x20e   :  { %310 = vadd.xlane.f32.xlu0 %v308_v40 }
 0x20f   :  { %v309_v42 = vsel %vm305_vm1, %v300_v41, 0.0 }
 0x212   :  { %312 = vadd.xlane.f32.xlu0 %v309_v42 }
 0x29b   :  { %v311_v43 = vpop.xlane.xlu0 %310 }
 0x29c   :  { %v314_v44 = vmul.f32 0.03125, %v311_v43 }
 0x29e   :  { %v316_v45 = vsub.f32 %v308_v40, %v314_v44 }
 0x29f   :  { %v313_v46 = vpop.xlane.xlu0 %312 }
 0x2a0   :  { %v315_v47 = vmul.f32 0.03125, %v313_v46  ;;  %v318_v48 = vsel %vm305_vm1, %v316_v45, 0.0 }
 0x2a1   :  { %v320_v49 = vmul.f32 %v318_v48, %v318_v48 }
 0x2a2   :  { %v317_v50 = vsub.f32 %v309_v42, %v315_v47 }
 0x2a3   :  { %322 = vadd.xlane.f32.xlu1 %v320_v49 }
 0x2a4   :  { %v319_v51 = vsel %vm305_vm1, %v317_v50, 0.0 }
 0x2a5   :  { %v321_v52 = vmul.f32 %v319_v51, %v319_v51 }
 0x2a7   :  { %324 = vadd.xlane.f32.xlu1 %v321_v52 }
 0x330   :  { %v323_v53 = vpop.xlane.xlu1 %322 }
 0x331   :  { %v326_v54 = vmul.f32 0.03125, %v323_v53 }
 0x333   :  { %v328_v55 = vadd.f32 1e-06, %v326_v54 }
 0x334   :  { %v325_v56 = vpop.xlane.xlu1 %324 }
 0x335   :  { %474 = vrsqrt.f32 %v328_v55  ;;  %v327_v57 = vmul.f32 0.03125, %v325_v56 }
 0x337   :  { %v329_v58 = vadd.f32 1e-06, %v327_v57 }
 0x339   :  { %476 = vrsqrt.f32 %v329_v58 }
 0x33f   :  { %v475_v59 = vpop.eup %474 }
 0x340   :  { %v332_v61 = vmul.f32 %v475_v59, %v318_v48 }
 0x342   :  { %v340_v63 = vmul.f32 %v388_v60, %v332_v61 }
 0x343   :  { %v477_v0 = vpop.eup %476 }
 0x344   :  { %v333_v1 = vmul.f32 %v477_v0, %v319_v51  ;;  %v348_v2 = vadd.f32 %v389_v62, %v340_v63 }
 0x346   :  { %v341_v3 = vmul.f32 %v388_v60, %v333_v1  ;;  %350 = vst [vmem:[#allocation8] sm:$0xff] %v348_v2 }
 0x348   :  { %v349_v4 = vadd.f32 %v389_v62, %v341_v3 }
 0x34a   :  { %351 = vst [vmem:[#allocation8 + $0x8] sm:$0xff] %v349_v4 }
 0x34b   :  { %555 = shalt.err (!%p552_p0)
}
 0x34c   :  { %s556_s24 = scalar_lea.hbm %s705_s7, 256 }
 0x34d   :  { %p557_p1 = scmp.ne.s32.totalorder %s705_s7, %s556_s24  ;;  %p560_p2 = scmp.lt.u32.totalorder %s556_s24, %s705_s7 }
 0x34f   :  { %p562_p3 = pnand %p560_p2, %p557_p1 }
 0x351   :  { %565 = shalt.err (!%p562_p3)
}
 0x352   :  { %363 = dma.vmem_to_hbm [thread:$0]  %s358_s22, 256, %s705_s7, [#allocation4], %s576_s1, %s576_s1, %s577_s25  }
 0x353   :  { %570 = dma.done.wait [#allocation4], 256  }
 0x354   :  { %571 = vsyncadd [#allocation4], 4294967040 }
 0x355   :  { %367 = vsyncpa [#allocation3], 1 }
 0x356   :  { %368 = vsyncpa [#allocation6], 1 }
 0x357   :  { %369 = vsyncpa [#allocation4], 1 }

</bundles_post_ra>
